<compile_context>
chip_gen: v7x
topology: tpu7x:2x2x1
jax: 0.10.0
libtpu: 0.0.40
codegen_flags: <defaults>
</compile_context>

<pallas_src>
import functools

import jax
import jax.numpy as jnp
from jax.experimental import pallas as pl
from jax.experimental.pallas import tpu as pltpu

D_MODEL = 64
NUM_CLASSES = 4

# ~4 MiB per x input block: with double buffering (2 bufs) plus the tiny
# weight/bias/accumulator this stays well inside the scoped VMEM defaults on
# v5e (16 MiB) and v6e/v7x (32 MiB).
_X_BLOCK_BYTES_TARGET = 4 * 1024 * 1024


def _ecg_cls_kernel(x_ref, w_ref, b_ref, o_ref, acc_ref, *, inv_s):
    """Grid = (batch tiles, seq tiles); seq axis is the reduction axis."""
    j = pl.program_id(1)

    # Initialize the resident accumulator at the first seq step of each
    # batch tile.
    @pl.when(j == 0)
    def _():
        acc_ref[...] = jnp.zeros_like(acc_ref)

    # Running sum over the (lane-folded) sequence axis, accumulated in fp32.
    x = x_ref[...].astype(jnp.float32)          # (B_TILE, S_TILE, D2)
    acc_ref[...] += jnp.sum(x, axis=1)          # (B_TILE, D2)

    # Finalize once per batch tile: scale by the true 1/S, tiny matmul with the
    # fold-tiled weight (collapses lane folding inside the MXU), add bias.
    @pl.when(j == pl.num_programs(1) - 1)
    def _():
        x_mean = acc_ref[...] * inv_s           # (B_TILE, D2), mean over full S
        y = jnp.dot(x_mean, w_ref[...],
                    preferred_element_type=jnp.float32)   # (B_TILE, C)
        y = y + b_ref[...]                                 # broadcast (1, C)
        o_ref[...] = y.astype(o_ref.dtype)


def _pick_batch_tile(b, cap):
    # b_tile must equal B or be a multiple of 8 that divides B (output block
    # rule: second-to-last dim divisible by 8 unless it equals the full dim).
    if b <= cap:
        return b
    best = None
    for d in range(8, cap + 1, 8):
        if b % d == 0:
            best = d
    return best if best is not None else b


def _pick_seq_tile(s2, row_budget):
    # s_tile must divide s2 and be a multiple of 8, or equal s2 (block rule).
    if s2 <= max(row_budget, 1):
        return s2
    best = None
    d = 8
    while d <= min(s2, row_budget):
        if s2 % d == 0:
            best = d
        d += 8
    return best if best is not None else s2


def ecg_transformer_classification(x, weight, bias):
    """x: (B, S, D); weight: (C, D) (PyTorch nn.Linear layout); bias: (C,)."""
    B, S, D = x.shape
    C = weight.shape[0]

    # Lane packing: fold consecutive seq elements into the 128-lane axis when
    # D divides 128 and S divides evenly (free, contiguous reshape).
    fold = 1
    if D < 128 and 128 % D == 0 and S % (128 // D) == 0:
        fold = 128 // D
    S2 = S // fold
    D2 = D * fold
    x2 = x.reshape(B, S2, D2)

    # Tile sizing (~4 MiB x blocks).
    b_tile = _pick_batch_tile(B, 512)
    row_budget = max(1, _X_BLOCK_BYTES_TARGET // (4 * b_tile * D2))
    s_tile = _pick_seq_tile(S2, row_budget)

    grid = (B // b_tile, S2 // s_tile)

    # (D, C) so the kernel does [B, D2] @ [D2, C]; tiling the transposed weight
    # `fold` times lets the MXU matmul also collapse the lane-folded halves.
    w_t = weight.T.astype(jnp.float32)                    # (D, C)
    w_fold = jnp.tile(w_t, (fold, 1)) if fold > 1 else w_t  # (D2, C)
    b2 = bias.reshape(1, C).astype(jnp.float32)

    kernel = functools.partial(_ecg_cls_kernel, inv_s=1.0 / S)

    return pl.pallas_call(
        kernel,
        out_shape=jax.ShapeDtypeStruct((B, C), x.dtype),
        grid=grid,
        in_specs=[
            pl.BlockSpec((b_tile, s_tile, D2), lambda i, j: (i, j, 0)),
            pl.BlockSpec((D2, C), lambda i, j: (0, 0)),   # weight stays resident
            pl.BlockSpec((1, C), lambda i, j: (0, 0)),    # bias stays resident
        ],
        out_specs=pl.BlockSpec((b_tile, C), lambda i, j: (i, 0)),
        scratch_shapes=[pltpu.VMEM((b_tile, D2), jnp.float32)],
        compiler_params=pltpu.CompilerParams(
            dimension_semantics=("parallel", "arbitrary"),
            vmem_limit_bytes=32 * 1024 * 1024,
        ),
    )(x2, w_fold, b2)


if __name__ == "__main__":
    key = jax.random.PRNGKey(0)
    k_x, k_w, k_b = jax.random.split(key, 3)

    batch, seq = 2, 8
    x = jax.random.normal(k_x, (batch, seq, D_MODEL), dtype=jnp.float32)

    # Deterministic "nn.Linear(d_model, num_classes)" parameters
    # (PyTorch stores weight as (num_classes, d_model)).
    bound = 1.0 / (D_MODEL ** 0.5)
    weight = jax.random.uniform(k_w, (NUM_CLASSES, D_MODEL),
                                minval=-bound, maxval=bound,
                                dtype=jnp.float32)
    bias = jax.random.uniform(k_b, (NUM_CLASSES,),
                              minval=-bound, maxval=bound,
                              dtype=jnp.float32)

    out = ecg_transformer_classification(x, weight, bias)
    out = jax.block_until_ready(out)

    # Pure-JAX reference for correctness.
    ref = jnp.mean(x, axis=1) @ weight.T + bias
    assert out.shape == (batch, NUM_CLASSES)
    assert jnp.allclose(out, ref, atol=1e-5, rtol=1e-5)

    print("KERNEL_OK")
</pallas_src>

<mosaic_0001>
module attributes {stable_mosaic.version = 11 : i64} {
  func.func @_ecg_cls_kernel(%arg0: i32, %arg1: i32, %arg2: memref<2x4x128xf32, #tpu.memory_space<vmem>>, %arg3: memref<128x4xf32, #tpu.memory_space<vmem>>, %arg4: memref<1x4xf32, #tpu.memory_space<vmem>>, %arg5: memref<2x4xf32, #tpu.memory_space<vmem>>, %arg6: memref<2x128xf32, #tpu.memory_space<vmem>>) attributes {dimension_semantics = [#tpu.dimension_semantics<parallel>, #tpu.dimension_semantics<arbitrary>], iteration_bounds = array<i64: 1, 1>, scalar_prefetch = 0 : i64, scratch_operands = 1 : i64, tpu.core_type = #tpu.core_type<tc>, window_params = [{transform_indices = @transform_0, window_bounds = array<i64: 2, 4, 128>}, {pipeline_mode = #tpu.pipeline_mode<synchronous>, transform_indices = @transform_1, window_bounds = array<i64: 128, 4>}, {pipeline_mode = #tpu.pipeline_mode<synchronous>, transform_indices = @transform_2, window_bounds = array<i64: 1, 4>}, {transform_indices = @transform_3, window_bounds = array<i64: 2, 4>}]} {
    %c0_i32 = arith.constant 0 : i32
    %0 = arith.cmpi eq, %arg1, %c0_i32 : i32
    %1 = arith.extui %0 : i1 to i32
    %c0_i32_0 = arith.constant 0 : i32
    %2 = arith.cmpi ne, %1, %c0_i32_0 : i32
    scf.if %2 {
      %cst_9 = arith.constant 0.000000e+00 : f32
      %11 = vector.broadcast %cst_9 : f32 to vector<2x128xf32>
      %c0_10 = arith.constant 0 : index
      %c0_11 = arith.constant 0 : index
      %12 = vector.load %arg6[%c0_10, %c0_11] : memref<2x128xf32, #tpu.memory_space<vmem>>, vector<2x128xf32>
      tpu.vector_store %arg6[%c0_10, %c0_11], %11 {strides = array<i32>} : memref<2x128xf32, #tpu.memory_space<vmem>>, vector<2x128xf32>,
    } else {
    }
    %c0 = arith.constant 0 : index
    %c0_1 = arith.constant 0 : index
    %c0_2 = arith.constant 0 : index
    %3 = vector.load %arg2[%c0, %c0_1, %c0_2] : memref<2x4x128xf32, #tpu.memory_space<vmem>>, vector<2x4x128xf32>
    %c0_3 = arith.constant 0 : index
    %c0_4 = arith.constant 0 : index
    %4 = vector.load %arg6[%c0_3, %c0_4] : memref<2x128xf32, #tpu.memory_space<vmem>>, vector<2x128xf32>
    %cst = arith.constant dense<0.000000e+00> : vector<2x128xf32>
    %5 = vector.multi_reduction <add>, %3, %cst [1] : vector<2x4x128xf32> to vector<2x128xf32>
    %6 = arith.addf %4, %5 : vector<2x128xf32>
    %c0_5 = arith.constant 0 : index
    %c0_6 = arith.constant 0 : index
    %7 = vector.load %arg6[%c0_5, %c0_6] : memref<2x128xf32, #tpu.memory_space<vmem>>, vector<2x128xf32>
    tpu.vector_store %arg6[%c0_5, %c0_6], %6 {strides = array<i32>} : memref<2x128xf32, #tpu.memory_space<vmem>>, vector<2x128xf32>,
    %c0_i32_7 = arith.constant 0 : i32
    %8 = arith.cmpi eq, %arg1, %c0_i32_7 : i32
    %9 = arith.extui %8 : i1 to i32
    %c0_i32_8 = arith.constant 0 : i32
    %10 = arith.cmpi ne, %9, %c0_i32_8 : i32
    scf.if %10 {
      %c0_9 = arith.constant 0 : index
      %c0_10 = arith.constant 0 : index
      %11 = vector.load %arg6[%c0_9, %c0_10] : memref<2x128xf32, #tpu.memory_space<vmem>>, vector<2x128xf32>
      %cst_11 = arith.constant 1.250000e-01 : f32
      %12 = vector.broadcast %cst_11 : f32 to vector<2x128xf32>
      %13 = arith.mulf %11, %12 : vector<2x128xf32>
      %c0_12 = arith.constant 0 : index
      %c0_13 = arith.constant 0 : index
      %14 = vector.load %arg3[%c0_12, %c0_13] : memref<128x4xf32, #tpu.memory_space<vmem>>, vector<128x4xf32>
      %cst_14 = arith.constant dense<0.000000e+00> : vector<2x4xf32>
      %15 = tpu.matmul %13, %14, %cst_14 {dimension_numbers = #tpu.dot_dimension_numbers<[1], [0], [0], [1], [0, 0, 1, 1], [], []>} : vector<2x128xf32>, vector<128x4xf32>, vector<2x4xf32> -> vector<2x4xf32>
      %c0_15 = arith.constant 0 : index
      %c0_16 = arith.constant 0 : index
      %16 = vector.load %arg4[%c0_15, %c0_16] : memref<1x4xf32, #tpu.memory_space<vmem>>, vector<1x4xf32>
      %17 = vector.broadcast %16 : vector<1x4xf32> to vector<2x4xf32>
      %18 = arith.addf %15, %17 : vector<2x4xf32>
      %c0_17 = arith.constant 0 : index
      %c0_18 = arith.constant 0 : index
      %19 = vector.load %arg5[%c0_17, %c0_18] : memref<2x4xf32, #tpu.memory_space<vmem>>, vector<2x4xf32>
      tpu.vector_store %arg5[%c0_17, %c0_18], %18 {strides = array<i32>} : memref<2x4xf32, #tpu.memory_space<vmem>>, vector<2x4xf32>,
    } else {
    }
    return
  }
  func.func @transform_0(%arg0: i32, %arg1: i32) -> (i32, i32, i32) {
    %c0_i32 = arith.constant 0 : i32
    %c0_i32_0 = arith.constant 0 : i32
    return %arg0, %arg1, %c0_i32 : i32, i32, i32
  }
  func.func @transform_1(%arg0: i32, %arg1: i32) -> (i32, i32) {
    %c0_i32 = arith.constant 0 : i32
    %c0_i32_0 = arith.constant 0 : i32
    %c0_i32_1 = arith.constant 0 : i32
    return %c0_i32, %c0_i32_0 : i32, i32
  }
  func.func @transform_2(%arg0: i32, %arg1: i32) -> (i32, i32) {
    %c0_i32 = arith.constant 0 : i32
    %c0_i32_0 = arith.constant 0 : i32
    %c0_i32_1 = arith.constant 0 : i32
    return %c0_i32, %c0_i32_0 : i32, i32
  }
  func.func @transform_3(%arg0: i32, %arg1: i32) -> (i32, i32) {
    %c0_i32 = arith.constant 0 : i32
    %c0_i32_0 = arith.constant 0 : i32
    return %arg0, %c0_i32 : i32, i32
  }
}

</mosaic_0001>

<bundles_post_ra>
// kernel: tpu_custom_call.1
= control target key start
LH: loop header
LB: loop body
LE: loop exit
PB: predicated region body
PF: predicated region fallthrough
CT: control target
= control target key end

     0   :  { %v264_v3 = vmov 0.0|0.0   ;;  %v265_v6 = vmov 0.0   ;;  %vm266_vm0 = vmmov 0   ;;  %vm23_vm1 = vcmask 1043456   ;;  %s365_s0 = inlined_call_operand.vmem [shape: f32[2,4,128], index: 0, kind: input, shape index: {}]   ;;  %s366_s1 = inlined_call_operand.vmem [shape: f32[128,4], index: 1, kind: input, shape index: {}]   ;;  %s367_s2 = inlined_call_operand.vmem [shape: f32[1,4], index: 2, kind: input, shape index: {}]   ;;  %s368_s3 = inlined_call_operand.hbm [shape: f32[2,4], index: 3, kind: output, shape index: {}]  }
   0x1   :  { %v50_v0 = vld [vmem:[%s366_s1] sm:$0xff]  ;;  %v51_v1 = vld [vmem:[%s366_s1 + $0x8] sm:$0xff]  ;;  %v52_v2 = vld [vmem:[%s366_s1 + $0x10] sm:$0xff]  ;;  %212 = vmatprep.subr.bf16.mxu0 %v264_v3  ;;  %19 = vst [vmem:[#allocation2] sm:$0x3] %v265_v6  ;;  %209 = vmatprep.mubr.msk.f32.mxu0 %vm266_vm0, %v265_v6 }
   0x2   :  { %v213_v4 = vpack.c.bf16 %v51_v1, %v50_v0  ;;  %v53_v5 = vld [vmem:[%s366_s1 + $0x18] sm:$0xff]  ;;  %v54_v8 = vld [vmem:[%s366_s1 + $0x20] sm:$0xff]  ;;  %v55_v9 = vld [vmem:[%s366_s1 + $0x28] sm:$0xff] }
   0x3   :  { %v216_v7 = vpack.c.bf16 %v53_v5, %v52_v2  ;;  %v20_v10 = vld [vmem:[%s365_s0] sm:$0xf]  ;;  %v21_v11 = vld [vmem:[%s365_s0 + $0x4] sm:$0xf] }
   0x4   :  { %214 = vmatpush3.bf16.msra.mxu0 %v213_v4  ;;  %v24_v12 = vsel %vm23_vm1, %v20_v10, 0.0  ;;  %v31_v13 = vsel %vm23_vm1, %v21_v11, 0.0 }
   0x5   :  { %215 = vmatprep.subr.bf16.mxu0 %v264_v3 }
   0x6   :  { %8 = vsyncpa [#allocation4], 0  ;;  %v219_v14 = vpack.c.bf16 %v55_v9, %v54_v8  ;;  %v25_v15 = vrot.slane %v24_v12, 4  ;;  %v32_v16 = vrot.slane %v31_v13, 4  ;;  %v56_v17 = vld [vmem:[%s366_s1 + $0x30] sm:$0xff]  ;;  %v57_v18 = vld [vmem:[%s366_s1 + $0x38] sm:$0xff] }
   0x7   :  { %v222_v21 = vpack.c.bf16 %v57_v18, %v56_v17  ;;  %v58_v24 = vld [vmem:[%s366_s1 + $0x40] sm:$0xff]  ;;  %v59_v25 = vld [vmem:[%s366_s1 + $0x48] sm:$0xff]  ;;  %v60_v31 = vld [vmem:[%s366_s1 + $0x50] sm:$0xff]  ;;  %vm40_vm2 = vcmask 1041409   ;;  %s267_s22 = smov [#allocation3]   ;;  %vm143_vm3 = vcmask 25600  }
   0x8   :  { %217 = vmatpush3.bf16.msra.mxu0 %v216_v7  ;;  %v26_v19 = vadd.f32 %v25_v15, %v24_v12  ;;  %v33_v20 = vadd.f32 %v32_v16, %v31_v13  ;;  %v225_v28 = vpack.c.bf16 %v59_v25, %v58_v24  ;;  %v61_v32 = vld [vmem:[%s366_s1 + $0x58] sm:$0xff]  ;;  %v22_v33 = vld [vmem:[#allocation2] sm:$0x3]  ;;  %v63_v39 = vld [vmem:[%s366_s1 + $0x68] sm:$0xff]  ;;  %s151_s23 = sshll.u32 %s267_s22, 4  ;;  %s152_s23 = int_to_ptr.vmem [resolvable:$true] %s151_s23 }
   0x9   :  { %218 = vmatprep.subr.bf16.mxu0 %v264_v3  ;;  %v228_v36 = vpack.c.bf16 %v61_v32, %v60_v31  ;;  %v62_v38 = vld [vmem:[%s366_s1 + $0x60] sm:$0xff]  ;;  %v64_v42 = vld [vmem:[%s366_s1 + $0x70] sm:$0xff]  ;;  %v65_v43 = vld [vmem:[%s366_s1 + $0x78] sm:$0xff]  ;;  %s240_s1 = scalar_lea.vmem %s152_s23, 32  ;;  %p245_p1 = scmp.lt.s32.totalorder %s152_s23, %s152_s23 }
   0xa   :  { %v27_v22 = vrot.slane %v26_v19, 2  ;;  %v34_v23 = vrot.slane %v33_v20, 2  ;;  %v231_v41 = vpack.c.bf16 %v63_v39, %v62_v38  ;;  %v234_v44 = vpack.c.bf16 %v65_v43, %v64_v42  ;;  %v159_v47 = vld [vmem:[%s367_s2] ss:$0 sm:$0xff]  ;;  %p241_p0 = scmp.ne.s32.totalorder %s152_s23, %s240_s1  ;;  %p246_p2 = scmp.lt.s32.totalorder %s240_s1, %s240_s1 }
   0xc   :  { %220 = vmatpush3.bf16.msra.mxu0 %v219_v14  ;;  %v28_v26 = vadd.f32 %v27_v22, %v26_v19  ;;  %v35_v27 = vadd.f32 %v34_v23, %v33_v20  ;;  %p247_p3 = por %p246_p2, %p245_p1 }
   0xd   :  { %221 = vmatprep.subr.bf16.mxu0 %v264_v3 }
   0xe   :  { %v29_v29 = vrot.slane %v28_v26, 1  ;;  %v36_v30 = vrot.slane %v35_v27, 1  ;;  %p248_p4 = pnand %p247_p3, %p241_p0 }
  0x10   :  { %223 = vmatpush3.bf16.msra.mxu0 %v222_v21  ;;  %v30_v34 = vadd.f32 %v29_v29, %v28_v26  ;;  %v37_v35 = vadd.f32 %v36_v30, %v35_v27 }
  0x11   :  { %224 = vmatprep.subr.bf16.mxu0 %v264_v3 }
  0x12   :  { %v41_v37 = vsel %vm40_vm2, %v37_v35, %v30_v34 }
  0x13   :  { %v43_v40 = vadd.f32 %v41_v37, %v22_v33 }
  0x14   :  { %226 = vmatpush3.bf16.msra.mxu0 %v225_v28 }
  0x15   :  { %227 = vmatprep.subr.bf16.mxu0 %v264_v3  ;;  %44 = vst [vmem:[#allocation2] sm:$0x3] %v43_v40 }
  0x18   :  { %229 = vmatpush3.bf16.msra.mxu0 %v228_v36 }
  0x19   :  { %230 = vmatprep.subr.bf16.mxu0 %v264_v3 }
  0x1c   :  { %232 = vmatpush3.bf16.msra.mxu0 %v231_v41  ;;  %v48_v45 = vld [vmem:[#allocation2] sm:$0x3] }
  0x1d   :  { %233 = vmatprep.subr.bf16.mxu0 %v264_v3  ;;  %v49_v46 = vmul.f32 0.125, %v48_v45 }
  0x20   :  { %235 = vmatpush3.bf16.msra.mxu0 %v234_v44 }
  0x23   :  { %210 = vmatmul.mubr.f32.vlgmr.msra.gmra.mrb[0].mxu0 %v49_v46 }
  0xf6   :  { %v139_v48 = vpop.f32.mrb[0].mxu0 }
  0xf7   :  { %v140_v49 = vadd.f32 %v159_v47, %v139_v48  ;;  %v211_v50 = vpop.f32.mrb[1].mxu0 }
  0xf9   :  { %144 = vst.msk [vmem:[#allocation3] sm:$0x3] %vm143_vm3, %v140_v49 }
  0xfa   :  { %251 = shalt.err (!%p248_p4)
}
  0xfb   :  { %s252_s26 = scalar_lea.hbm %s368_s3, 32 }
  0xfc   :  { %p253_p5 = scmp.ne.s32.totalorder %s368_s3, %s252_s26  ;;  %p256_p6 = scmp.lt.u32.totalorder %s252_s26, %s368_s3 }
  0xfe   :  { %p258_p7 = pnand %p256_p6, %p253_p5 }
 0x100   :  { %261 = shalt.err (!%p258_p7)
}
 0x101   :  { %154 = dma.vmem_to_hbm [thread:$0]  %s152_s23, 32, %s368_s3, [#allocation4]  }
 0x102   :  { %262 = dma.done.wait [#allocation4], 32  }
 0x103   :  { %263 = vsyncadd [#allocation4], 4294967264 }
 0x104   :  { %158 = vsyncpa [#allocation4], 1 }

</bundles_post_ra>
